<compile_context>
chip_gen: v6e
topology: v6e:2x2x1
jax: 0.10.0
libtpu: 0.0.40
codegen_flags: <defaults>
</compile_context>

<pallas_src>
import functools

import numpy as np
import jax
import jax.numpy as jnp
from jax.experimental import pallas as pl
from jax.experimental.pallas import tpu as pltpu


def _round_up(x, m):
    return ((x + m - 1) // m) * m


def _loss_kernel(logits_ref, tgt_ref, out_ref, counts_acc, nll_acc, *,
                 upper_bound, norm):
    t_idx = pl.program_id(1)

    @pl.when(t_idx == 0)
    def _():
        counts_acc[...] = jnp.zeros_like(counts_acc)
        nll_acc[...] = jnp.zeros_like(nll_acc)

    x = logits_ref[0].astype(jnp.float32)   # (C, TILE) logits tile (bf16 -> f32)
    t = tgt_ref[0]                          # (1, TILE) int32 targets tile
    C, TILE = x.shape

    # ---- streaming log-softmax pieces for this tile -------------------------
    m = jnp.max(x, axis=0, keepdims=True)                             # (1, TILE)
    lse = jnp.log(jnp.sum(jnp.exp(x - m), axis=0, keepdims=True))     # (1, TILE)
    mlse = m + lse                                                    # (1, TILE)

    # one-hot of targets; ignore_index=255 (and tail padding) matches nothing.
    class_ids = jax.lax.broadcasted_iota(jnp.int32, (C, TILE), 0)
    onehot = (jnp.broadcast_to(t, (C, TILE)) == class_ids).astype(jnp.float32)

    # ---- accumulate per-class pixel counts and per-class NLL sums -----------
    # NLL_c contribution of a pixel with label c is (m + lse) - x[c]; the full
    # (C, TILE) logp is never materialized.
    counts_acc[...] += jnp.sum(onehot, axis=1, keepdims=True)                    # (C, 1)
    nll_acc[...] += jnp.sum(onehot * (jnp.broadcast_to(mlse, (C, TILE)) - x),
                            axis=1, keepdims=True)                               # (C, 1)

    # ---- finalize at the last pixel tile of this image -----------------------
    @pl.when(t_idx == pl.num_programs(1) - 1)
    def _():
        counts = counts_acc[...]                       # (C, 1)
        nll = nll_acc[...]                             # (C, 1)
        total = jnp.sum(counts)
        total = jnp.where(total > 0.0, total, 1.0)     # guard all-ignored image
        hist = counts / total
        # Note: np.histogram's closed right bin edge (labels == num_classes)
        # is intentionally not handled; valid segmentation labels are
        # 0..C-1 or ignore_index.
        if norm:
            w = jnp.where(hist != 0.0, upper_bound / hist, 0.0) + 1.0
        else:
            w = jnp.where(hist != 0.0, upper_bound * (1.0 - hist), 0.0) + 1.0
        num = jnp.sum(w * nll)
        den = jnp.sum(w * counts)
        out_ref[...] = jnp.broadcast_to(num / den, out_ref.shape)


def image_based_cross_entropy_loss_2d(inputs, targets, *, num_classes,
                                      upper_bound=1.0, norm=False,
                                      ignore_index=255, max_tile=8192):
    """inputs: (N, C, H, W) float logits (f32 or bf16);
    targets: (N, H, W) int labels (ignore_index = invalid)."""
    N, C, H, W = inputs.shape
    assert C == num_classes
    HW = H * W

    # Lane-dense pixel tile: multiple of 128, capped at max_tile.
    tile = _round_up(min(int(max_tile), _round_up(HW, 128)), 128)
    hw_pad = _round_up(HW, tile)
    num_tiles = hw_pad // tile

    logits = inputs.reshape(N, C, HW)                # keep native dtype in HBM
    tgts = targets.reshape(N, 1, HW).astype(jnp.int32)
    if hw_pad != HW:
        # Tail padding: targets get ignore_index so padded pixels contribute
        # nothing to histogram or loss.
        logits = jnp.pad(logits, ((0, 0), (0, 0), (0, hw_pad - HW)))
        tgts = jnp.pad(tgts, ((0, 0), (0, 0), (0, hw_pad - HW)),
                       constant_values=ignore_index)

    kernel = functools.partial(_loss_kernel, upper_bound=float(upper_bound),
                               norm=bool(norm))

    # VMEM budget: double-buffered input blocks + f32 intermediates headroom.
    itemsize = jnp.dtype(logits.dtype).itemsize
    est = 4 * (C * tile * itemsize + tile * 4) + 10 * C * tile * 4
    vmem_limit = int(min(64 * 1024 * 1024, max(32 * 1024 * 1024, est)))

    per_image = pl.pallas_call(
        kernel,
        out_shape=jax.ShapeDtypeStruct((N, 1, 1), jnp.float32),
        grid_spec=pltpu.PrefetchScalarGridSpec(
            num_scalar_prefetch=0,
            grid=(N, num_tiles),
            in_specs=[
                pl.BlockSpec((1, C, tile), lambda i, t: (i, 0, t)),
                pl.BlockSpec((1, 1, tile), lambda i, t: (i, 0, t)),
            ],
            out_specs=pl.BlockSpec((1, 1, 1), lambda i, t: (i, 0, 0)),
            scratch_shapes=[
                pltpu.VMEM((C, 1), jnp.float32),   # per-class pixel counts
                pltpu.VMEM((C, 1), jnp.float32),   # per-class NLL sums
            ],
        ),
        compiler_params=pltpu.CompilerParams(
            dimension_semantics=("parallel", "arbitrary"),
            vmem_limit_bytes=vmem_limit,
        ),
    )(logits, tgts)

    return jnp.sum(per_image)


def _reference_loss(inputs, targets, *, upper_bound=1.0, norm=False):
    """Pure numpy reference matching the PyTorch module."""
    inputs = np.asarray(inputs, np.float32)
    targets = np.asarray(targets)
    N, C, H, W = inputs.shape
    total = 0.0
    for i in range(N):
        x = inputs[i].reshape(C, -1)
        t = targets[i].reshape(-1)
        hist = np.histogram(t, bins=range(C + 1), density=True)[0]
        if norm:
            w = (hist != 0) * upper_bound * (1.0 / hist) + 1
        else:
            w = (hist != 0) * upper_bound * (1.0 - hist) + 1
        m = x.max(axis=0, keepdims=True)
        logp = x - m - np.log(np.exp(x - m).sum(axis=0, keepdims=True))
        valid = t != 255
        idx = np.where(valid)[0]
        tv = t[idx]
        lp = logp[tv, idx]
        wv = w[tv]
        total += -(wv * lp).sum() / wv.sum()
    return np.float32(total)


if __name__ == "__main__":
    key = jax.random.PRNGKey(0)
    for (N, C, H, W) in [(2, 4, 16, 16), (2, 4, 10, 12)]:
        key, k1, k2, k3 = jax.random.split(key, 4)
        inputs = jax.random.normal(k1, (N, C, H, W), dtype=jnp.float32)
        targets = jax.random.randint(k2, (N, H, W), 0, C, dtype=jnp.int32)
        ignore_mask = jax.random.uniform(k3, (N, H, W)) < 0.1
        targets = jnp.where(ignore_mask, 255, targets)

        ref = _reference_loss(np.asarray(inputs), np.asarray(targets))
        # max_tile=8192 -> single-tile path; max_tile=128 -> streamed multi-tile
        # path (exercises accumulator init/finalize and padding).
        for max_tile in (8192, 128):
            loss = image_based_cross_entropy_loss_2d(
                inputs, targets, num_classes=C, max_tile=max_tile)
            loss = jax.block_until_ready(loss)
            assert np.allclose(np.asarray(loss), ref, rtol=1e-4, atol=1e-4), (
                (N, C, H, W), max_tile, float(loss), float(ref))

    print("KERNEL_OK")
</pallas_src>

<mosaic_0001>
module attributes {stable_mosaic.version = 11 : i64} {
  func.func @_loss_kernel(%arg0: i32, %arg1: i32, %arg2: memref<1x4x256xf32, #tpu.memory_space<vmem>>, %arg3: memref<1x1x256xi32, #tpu.memory_space<vmem>>, %arg4: memref<1x1x1xf32, #tpu.memory_space<vmem>>, %arg5: memref<4x1xf32, #tpu.memory_space<vmem>>, %arg6: memref<4x1xf32, #tpu.memory_space<vmem>>) attributes {dimension_semantics = [#tpu.dimension_semantics<parallel>, #tpu.dimension_semantics<arbitrary>], iteration_bounds = array<i64: 2, 1>, scalar_prefetch = 0 : i64, scratch_operands = 2 : i64, tpu.core_type = #tpu.core_type<tc>, window_params = [{transform_indices = @transform_0, window_bounds = array<i64: 1, 4, 256>}, {transform_indices = @transform_1, window_bounds = array<i64: 1, 1, 256>}, {transform_indices = @transform_2, window_bounds = array<i64: 1, 1, 1>}]} {
    %c0_i32 = arith.constant 0 : i32
    %0 = arith.cmpi eq, %arg1, %c0_i32 : i32
    %1 = arith.extui %0 : i1 to i32
    %c0_i32_0 = arith.constant 0 : i32
    %2 = arith.cmpi ne, %1, %c0_i32_0 : i32
    scf.if %2 {
      %cst_19 = arith.constant 0.000000e+00 : f32
      %39 = vector.broadcast %cst_19 : f32 to vector<4x1xf32>
      %c0_20 = arith.constant 0 : index
      %c0_21 = arith.constant 0 : index
      %40 = vector.load %arg5[%c0_20, %c0_21] : memref<4x1xf32, #tpu.memory_space<vmem>>, vector<4x1xf32>
      tpu.vector_store %arg5[%c0_20, %c0_21], %39 {strides = array<i32>} : memref<4x1xf32, #tpu.memory_space<vmem>>, vector<4x1xf32>,
      %cst_22 = arith.constant 0.000000e+00 : f32
      %41 = vector.broadcast %cst_22 : f32 to vector<4x1xf32>
      %c0_23 = arith.constant 0 : index
      %c0_24 = arith.constant 0 : index
      %42 = vector.load %arg6[%c0_23, %c0_24] : memref<4x1xf32, #tpu.memory_space<vmem>>, vector<4x1xf32>
      tpu.vector_store %arg6[%c0_23, %c0_24], %41 {strides = array<i32>} : memref<4x1xf32, #tpu.memory_space<vmem>>, vector<4x1xf32>,
    } else {
    }
    %c0 = arith.constant 0 : index
    %c0_1 = arith.constant 0 : index
    %c0_2 = arith.constant 0 : index
    %3 = vector.load %arg2[%c0, %c0_1, %c0_2] : memref<1x4x256xf32, #tpu.memory_space<vmem>>, vector<1x4x256xf32>
    %4 = vector.shape_cast %3 : vector<1x4x256xf32> to vector<4x256xf32>
    %c0_3 = arith.constant 0 : index
    %c0_4 = arith.constant 0 : index
    %c0_5 = arith.constant 0 : index
    %5 = vector.load %arg3[%c0_3, %c0_4, %c0_5] : memref<1x1x256xi32, #tpu.memory_space<vmem>>, vector<1x1x256xi32>
    %6 = vector.shape_cast %5 : vector<1x1x256xi32> to vector<1x256xi32>
    %cst = arith.constant dense<0xFF800000> : vector<256xf32>
    %7 = vector.multi_reduction <maximumf>, %4, %cst [0] : vector<4x256xf32> to vector<256xf32>
    %8 = vector.shape_cast %7 : vector<256xf32> to vector<1x256xf32>
    %9 = vector.broadcast %8 : vector<1x256xf32> to vector<4x256xf32>
    %10 = arith.subf %4, %9 : vector<4x256xf32>
    %11 = math.exp %10 : vector<4x256xf32>
    %cst_6 = arith.constant dense<0.000000e+00> : vector<256xf32>
    %12 = vector.multi_reduction <add>, %11, %cst_6 [0] : vector<4x256xf32> to vector<256xf32>
    %13 = vector.shape_cast %12 : vector<256xf32> to vector<1x256xf32>
    %14 = math.log %13 : vector<1x256xf32>
    %15 = arith.addf %8, %14 : vector<1x256xf32>
    %16 = tpu.iota {dimensions = array<i32: 0>} : vector<4x256xi32>
    %17 = vector.shape_cast %6 : vector<1x256xi32> to vector<1x256xi32>
    %18 = vector.broadcast %17 : vector<1x256xi32> to vector<4x256xi32>
    %19 = arith.cmpi eq, %18, %16 : vector<4x256xi32>
    %20 = arith.extui %19 : vector<4x256xi1> to vector<4x256xi32>
    %21 = arith.sitofp %20 : vector<4x256xi32> to vector<4x256xf32>
    %c0_7 = arith.constant 0 : index
    %c0_8 = arith.constant 0 : index
    %22 = vector.load %arg5[%c0_7, %c0_8] : memref<4x1xf32, #tpu.memory_space<vmem>>, vector<4x1xf32>
    %cst_9 = arith.constant dense<0.000000e+00> : vector<4xf32>
    %23 = vector.multi_reduction <add>, %21, %cst_9 [1] : vector<4x256xf32> to vector<4xf32>
    %24 = vector.shape_cast %23 : vector<4xf32> to vector<4x1xf32>
    %25 = arith.addf %22, %24 : vector<4x1xf32>
    %c0_10 = arith.constant 0 : index
    %c0_11 = arith.constant 0 : index
    %26 = vector.load %arg5[%c0_10, %c0_11] : memref<4x1xf32, #tpu.memory_space<vmem>>, vector<4x1xf32>
    tpu.vector_store %arg5[%c0_10, %c0_11], %25 {strides = array<i32>} : memref<4x1xf32, #tpu.memory_space<vmem>>, vector<4x1xf32>,
    %c0_12 = arith.constant 0 : index
    %c0_13 = arith.constant 0 : index
    %27 = vector.load %arg6[%c0_12, %c0_13] : memref<4x1xf32, #tpu.memory_space<vmem>>, vector<4x1xf32>
    %28 = vector.shape_cast %15 : vector<1x256xf32> to vector<1x256xf32>
    %29 = vector.broadcast %28 : vector<1x256xf32> to vector<4x256xf32>
    %30 = arith.subf %29, %4 : vector<4x256xf32>
    %31 = arith.mulf %21, %30 : vector<4x256xf32>
    %cst_14 = arith.constant dense<0.000000e+00> : vector<4xf32>
    %32 = vector.multi_reduction <add>, %31, %cst_14 [1] : vector<4x256xf32> to vector<4xf32>
    %33 = vector.shape_cast %32 : vector<4xf32> to vector<4x1xf32>
    %34 = arith.addf %27, %33 : vector<4x1xf32>
    %c0_15 = arith.constant 0 : index
    %c0_16 = arith.constant 0 : index
    %35 = vector.load %arg6[%c0_15, %c0_16] : memref<4x1xf32, #tpu.memory_space<vmem>>, vector<4x1xf32>
    tpu.vector_store %arg6[%c0_15, %c0_16], %34 {strides = array<i32>} : memref<4x1xf32, #tpu.memory_space<vmem>>, vector<4x1xf32>,
    %c0_i32_17 = arith.constant 0 : i32
    %36 = arith.cmpi eq, %arg1, %c0_i32_17 : i32
    %37 = arith.extui %36 : i1 to i32
    %c0_i32_18 = arith.constant 0 : i32
    %38 = arith.cmpi ne, %37, %c0_i32_18 : i32
    scf.if %38 {
      %c0_19 = arith.constant 0 : index
      %c0_20 = arith.constant 0 : index
      %39 = vector.load %arg5[%c0_19, %c0_20] : memref<4x1xf32, #tpu.memory_space<vmem>>, vector<4x1xf32>
      %c0_21 = arith.constant 0 : index
      %c0_22 = arith.constant 0 : index
      %40 = vector.load %arg6[%c0_21, %c0_22] : memref<4x1xf32, #tpu.memory_space<vmem>>, vector<4x1xf32>
      %41 = vector.shape_cast %39 : vector<4x1xf32> to vector<1x4x1xf32>
      %cst_23 = arith.constant dense<0.000000e+00> : vector<1xf32>
      %42 = vector.multi_reduction <add>, %41, %cst_23 [1, 2] : vector<1x4x1xf32> to vector<1xf32>
      %43 = vector.shape_cast %42 : vector<1xf32> to vector<1x1x1xf32>
      %44 = vector.extract %43[0, 0, 0] : f32 from vector<1x1x1xf32>
      %cst_24 = arith.constant 0.000000e+00 : f32
      %45 = arith.cmpf ogt, %44, %cst_24 : f32
      %cst_25 = arith.constant 1.000000e+00 : f32
      %46 = arith.select %45, %44, %cst_25 : f32
      %47 = vector.broadcast %46 : f32 to vector<4x1xf32>
      %48 = arith.divf %39, %47 : vector<4x1xf32>
      %cst_26 = arith.constant 0.000000e+00 : f32
      %49 = vector.broadcast %cst_26 : f32 to vector<4x1xf32>
      %50 = arith.cmpf one, %48, %49 : vector<4x1xf32>
      %cst_27 = arith.constant 1.000000e+00 : f32
      %51 = vector.broadcast %cst_27 : f32 to vector<4x1xf32>
      %52 = arith.subf %51, %48 : vector<4x1xf32>
      %cst_28 = arith.constant 1.000000e+00 : f32
      %53 = vector.broadcast %cst_28 : f32 to vector<4x1xf32>
      %54 = arith.mulf %53, %52 : vector<4x1xf32>
      %cst_29 = arith.constant 0.000000e+00 : f32
      %55 = vector.broadcast %cst_29 : f32 to vector<4x1xf32>
      %56 = arith.select %50, %54, %55 : vector<4x1xi1>, vector<4x1xf32>
      %cst_30 = arith.constant 1.000000e+00 : f32
      %57 = vector.broadcast %cst_30 : f32 to vector<4x1xf32>
      %58 = arith.addf %56, %57 : vector<4x1xf32>
      %59 = arith.mulf %58, %40 : vector<4x1xf32>
      %60 = vector.shape_cast %59 : vector<4x1xf32> to vector<1x4x1xf32>
      %cst_31 = arith.constant dense<0.000000e+00> : vector<1xf32>
      %61 = vector.multi_reduction <add>, %60, %cst_31 [1, 2] : vector<1x4x1xf32> to vector<1xf32>
      %62 = vector.shape_cast %61 : vector<1xf32> to vector<1x1x1xf32>
      %63 = vector.extract %62[0, 0, 0] : f32 from vector<1x1x1xf32>
      %64 = arith.mulf %58, %39 : vector<4x1xf32>
      %65 = vector.shape_cast %64 : vector<4x1xf32> to vector<1x4x1xf32>
      %cst_32 = arith.constant dense<0.000000e+00> : vector<1xf32>
      %66 = vector.multi_reduction <add>, %65, %cst_32 [1, 2] : vector<1x4x1xf32> to vector<1xf32>
      %67 = vector.shape_cast %66 : vector<1xf32> to vector<1x1x1xf32>
      %68 = vector.extract %67[0, 0, 0] : f32 from vector<1x1x1xf32>
      %69 = arith.divf %63, %68 : f32
      %70 = vector.broadcast %69 : f32 to vector<1x1x1xf32>
      %c0_33 = arith.constant 0 : index
      %c0_34 = arith.constant 0 : index
      %c0_35 = arith.constant 0 : index
      %71 = vector.load %arg4[%c0_33, %c0_34, %c0_35] : memref<1x1x1xf32, #tpu.memory_space<vmem>>, vector<1x1x1xf32>
      tpu.vector_store %arg4[%c0_33, %c0_34, %c0_35], %70 {strides = array<i32>} : memref<1x1x1xf32, #tpu.memory_space<vmem>>, vector<1x1x1xf32>,
    } else {
    }
    return
  }
  func.func @transform_0(%arg0: i32, %arg1: i32) -> (i32, i32, i32) {
    %c0_i32 = arith.constant 0 : i32
    %c0_i32_0 = arith.constant 0 : i32
    return %arg0, %c0_i32, %arg1 : i32, i32, i32
  }
  func.func @transform_1(%arg0: i32, %arg1: i32) -> (i32, i32, i32) {
    %c0_i32 = arith.constant 0 : i32
    %c0_i32_0 = arith.constant 0 : i32
    return %arg0, %c0_i32, %arg1 : i32, i32, i32
  }
  func.func @transform_2(%arg0: i32, %arg1: i32) -> (i32, i32, i32) {
    %c0_i32 = arith.constant 0 : i32
    %c0_i32_0 = arith.constant 0 : i32
    %c0_i32_1 = arith.constant 0 : i32
    return %arg0, %c0_i32, %c0_i32_0 : i32, i32, i32
  }
}

</mosaic_0001>

<bundles_post_ra>
// kernel: tpu_custom_call.1
= control target key start
LH: loop header
LB: loop body
LE: loop exit
PB: predicated region body
PF: predicated region fallthrough
CT: control target
= control target key end

     0   :  { %7 = vsyncpa [#allocation5], 0  ;;  %s833_s0 = inlined_call_operand.hbm [shape: f32[2,4,256], index: 0, kind: input, shape index: {}]   ;;  %s834_s1 = inlined_call_operand.hbm [shape: s32[2,1,256], index: 1, kind: input, shape index: {}]   ;;  %s835_s2 = inlined_call_operand.vmem [shape: f32[2,1,1], index: 2, kind: output, shape index: {}]  }
   0x1   :  { %9 = vsyncpa [#allocation5 + $0x1], 0 }
   0x2   :  { %10 = vsyncpa [#allocation7], 0 }
   0x3   :  { %12 = vsyncpa [#allocation7 + $0x1], 0  ;;  %s690_s9 = smov 0   ;;  %s692_s10 = smov 0  }
   0x4   :  { %s694_s11 = smov 0   ;;  %s696_s12 = smov 0  }
   0x5   :  { %s698_s13 = smov 0   ;;  %s700_s14 = smov 0  }
   0x6 LB: > { %s461_s15 = sadd.s32 4294967295, %s670_s14   ;;  %s30_s16 = sadd.s32 1, %s666_s13  ;;  %s670_s14 = sphi %s700_s14, %s18_s14   ;;  %s666_s13 = sphi %s698_s13, %s844_s13   ;;  %s662_s12 = sphi %s696_s12, %s843_s12   ;;  %s658_s11 = sphi %s694_s11, %s842_s11   ;;  %s654_s10 = sphi %s692_s10, %s841_s10   ;;  %s650_s9 = sphi %s690_s9, %s840_s9  }
   0x7   : > { %p32_p0 = scmp.ge.s32.totalorder %s30_s16, 2  ;;  %s39_s17 = sadd.s32 1, %s658_s11 }
   0x8   : > { %p46_p1 = scmp.ne.s32.totalorder %s658_s11, %s654_s10  ;;  %p47_p2 = scmp.eq.s32.totalorder %s670_s14, 0 }
   0x9   : > { %s846_s16 = smov (%p32_p0, %s30_s16), 0  ;;  %p52_p4 = scmp.ne.s32.totalorder %s654_s10, %s650_s9 }
   0xa   : > { %p726_p3 = por %p47_p2, %p46_p1  ;;  %s34_s19 = ssub.s32 %s666_s13, %s846_s16 }
   0xb   : > { %p53_p5 = scmp.eq.s32.totalorder %s461_s15, 0  ;;  %p37_p6 = scmp.eq.s32.totalorder %s34_s19, 0 }
   0xc   : > { %p499_p8 = scmp.lt.s32.totalorder %s670_s14, 2  ;;  %s742_s22 = sand.u32 1, %s658_s11  }
   0xd   : > { %p733_p7 = por %p53_p5, %p52_p4  ;;  %s478_s23 = sshll.u32 %s666_s13, 7 }
   0xe   : > { %s739_s21 = scalar_select %p37_p6, %s658_s11, %s39_s17  }
   0xf   : > { %s465_s24 = sshll.u32 %s742_s22, 3  ;;  %s142_s27 = scalar_lea.hbm %s833_s0, %s478_s23 }
  0x10   : > { %s134_s28 = scalar_lea.vmem [#allocation4], %s465_s24  ;;  %p751_p9 = pnand %p499_p8, %p726_p3 }
  0x11   : > { %s144_s29 = sshll.u32 %s134_s28, 4  ;;  %p471_p10 = scmp.ge.s32.totalorder %s670_s14, 1  ;;  %s145_s29 = int_to_ptr.vmem [resolvable:$true] %s144_s29 }
  0x12   : > { %p170_p11 = scmp.lt.s32.totalorder %s670_s14, 3  ;;  %s131_s3 = scalar_lea.sflag [#allocation5], %s742_s22 }
  0x13   : > { %p562_p12 = pneg %p751_p9  ;;  %s573_s4 = scalar_lea.vmem %s145_s29, 128 }
  0x14   : > { %p574_p13 = scmp.ne.s32.totalorder %s145_s29, %s573_s4  ;;  %s672_s5 = smov [#allocation4]  }
  0x15   : > { %s578_s6 = sshll.u32 %s672_s5, 4  ;;  %s579_s6 = int_to_ptr.vmem [resolvable:$false] %s578_s6 }
  0x16   : > { %p576_p0 = pnand %p574_p13, %p562_p12  ;;  %s580_s7 = scalar_lea.vmem %s579_s6, 256 }
  0x17   : > { %p581_p2 = scmp.lt.s32.totalorder %s145_s29, %s579_s6  ;;  %p582_p3 = scmp.lt.s32.totalorder %s580_s7, %s573_s4 }
  0x18   : > { %p577_p1 = pneg %p576_p0 }
  0x19   : > { %p583_p4 = por %p582_p3, %p581_p2 }
  0x1b   : > { %p584_p5 = pnand %p583_p4, %p577_p1 }
  0x1d   : > { %587 = shalt.err (!%p584_p5)
}
  0x1e   : > { %495 = dma.hbm_to_vmem [thread:$0]  (!%p751_p9), %s142_s27, 128, %s145_s29, %s131_s3  }
  0x1f   : > { %p769_p6 = pnand %p471_p10, %p170_p11  ;;  %s468_s9 = sshll.u32 %s742_s22, 1 }
  0x20   : > { %s479_s15 = sshll.u32 %s666_s13, 5  ;;  %s155_s23 = scalar_lea.vmem [#allocation6], %s468_s9 }
  0x21   : > { %s163_s19 = scalar_lea.hbm %s834_s1, %s479_s15  ;;  %s165_s24 = sshll.u32 %s155_s23, 4  ;;  %s166_s24 = int_to_ptr.vmem [resolvable:$true] %s165_s24 }
  0x22   : > { %s152_s25 = scalar_lea.sflag [#allocation7], %s742_s22  ;;  %s601_s26 = scalar_lea.vmem %s166_s24, 32 }
  0x23   : > { %p602_p8 = scmp.ne.s32.totalorder %s166_s24, %s601_s26  ;;  %s673_s27 = smov [#allocation6]  }
  0x24   : > { %s606_s28 = sshll.u32 %s673_s27, 4  ;;  %s607_s28 = int_to_ptr.vmem [resolvable:$false] %s606_s28 }
  0x25   : > { %p604_p13 = pnand %p602_p8, %p562_p12  ;;  %s608_s29 = scalar_lea.vmem %s607_s28, 64 }
  0x26   : > { %p609_p10 = scmp.lt.s32.totalorder %s166_s24, %s607_s28  ;;  %p610_p11 = scmp.lt.s32.totalorder %s608_s29, %s601_s26 }
  0x27   : > { %p605_p0 = pneg %p604_p13 }
  0x28   : > { %p611_p1 = por %p610_p11, %p609_p10 }
  0x2a   : > { %p612_p2 = pnand %p611_p1, %p605_p0 }
  0x2c   : > { %615 = shalt.err (!%p612_p2)
}
  0x2d   : > { %498 = dma.hbm_to_vmem [thread:$0]  (!%p751_p9), %s163_s19, 32, %s166_s24, %s152_s25  }
  0x2e   : > { %174 = sbr.rel (%p769_p6) target bundleno = 715 (0x2cb), region = 28  ;;  %s176_s22 = sand.u32 (!%p769_p6), 1, %s654_s10  }
  0x2f   : > { %s472_s3 = sshll.u32 (!%p769_p6), %s176_s22, 3  ;;  %s177_s4 = scalar_lea.sflag (!%p769_p6), [#allocation5], %s176_s22 }
  0x30   : > { %s180_s5 = scalar_lea.vmem (!%p769_p6), [#allocation4], %s472_s3 }
  0x33   : > { %641 = dma.done.wait (%p733_p7), %s177_s4, 128  }
  0x34   : > { %643 = vsyncadd (%p733_p7), %s177_s4, 4294967168  ;;  %s473_s6 = sshll.u32 %s176_s22, 1  ;;  %s186_s7 = scalar_lea.sflag [#allocation7], %s176_s22 }
  0x35   : > { %s189_s9 = scalar_lea.vmem [#allocation6], %s473_s6 }
  0x36   : > { %645 = dma.done.wait (%p733_p7), %s186_s7, 32  }
  0x37   : > { %647 = vsyncadd (%p733_p7), %s186_s7, 4294967264  ;;  %vm222_vm0 = vcmask 3072   ;;  %v275_v0 = vlaneseq  ;;  %v674_v1 = vmov 0.0   ;;  %v226_v5 = vld [vmem:[%s189_s9] sm:$0x3]  ;;  %vm230_vm1 = vcmask 1043456  }
  0x38   : > { %223 = vst.msk [vmem:[#allocation2] sm:$0xf] %vm222_vm0, %v674_v1  ;;  %224 = vst.msk [vmem:[#allocation3] sm:$0xf] %vm222_vm0, %v674_v1  ;;  %v225_v13 = vld [vmem:[%s180_s5] sm:$0xff]  ;;  %p215_p9 = scmp.lt.s32.totalorder %s662_s12, 1 }
  0x39   : > { %v276_v2 = vshrl.u32 %v275_v0, 7  ;;  %v228_v14 = vcombine.high %v225_v13, %v225_v13  ;;  %v231_v15 = vsel %vm230_vm1, %v225_v13, -inf  ;;  %vm363_vm5 = vcmask 0  }
  0x3a   : > { %v232_v16 = vrot.slane %v231_v15, 4  ;;  %s850_s12 = smov (!%p215_p9, %s662_s12), 1 }
  0x3b   : > { %v279_v3 = vsub.s32 0, %v276_v2  ;;  %v283_v4 = vsub.s32 1, %v276_v2  ;;  %v238_v17 = vsel %vm230_vm1, %v228_v14, -inf  ;;  %s217_s19 = scalar_lea.vmem %s835_s2, %s850_s12 }
  0x3c   : > { %v233_v18 = vmax.f32 %v231_v15, %v232_v16  ;;  %v239_v19 = vrot.slane %v238_v17, 4 }
  0x3d   : > { %v280_v6 = vrot.slane %v226_v5, %v279_v3  ;;  %v284_v7 = vrot.slane %v226_v5, %v283_v4 }
  0x3e   : > { %v234_v20 = vrot.slane %v233_v18, 2  ;;  %v240_v21 = vmax.f32 %v238_v17, %v239_v19 }
  0x3f   : > { %vm285_vm2 = vcmp.eq.s32.totalorder %v280_v6, %v276_v2  ;;  %vm286_vm3 = vcmp.eq.s32.totalorder %v284_v7, %v276_v2  ;;  %v291_v61 = vld [vmem:[#allocation2] sm:$0xf]  ;;  %v300_v2 = vld [vmem:[#allocation3] sm:$0xf] }
  0x40   : > { %v474_v8 = vsel %vm285_vm2, 1.0, %v674_v1  ;;  %v475_v9 = vsel %vm286_vm3, 1.0, %v674_v1  ;;  %v235_v22 = vmax.f32 %v233_v18, %v234_v20  ;;  %v241_v23 = vrot.slane %v240_v21, 2 }
  0x41   : > { %v292_v10 = vsel %vm230_vm1, %v474_v8, 0.0  ;;  %v293_v11 = vsel %vm230_vm1, %v475_v9, 0.0 }
  0x42   : > { %v294_v12 = vadd.f32 %v293_v11, %v292_v10  ;;  %v236_v24 = vrot.slane %v235_v22, 1  ;;  %v242_v25 = vmax.f32 %v240_v21, %v241_v23 }
  0x44   : > { %295 = vadd.xlane.f32.xlu0 %v294_v12  ;;  %v237_v26 = vmax.f32 %v235_v22, %v236_v24  ;;  %v243_v27 = vrot.slane %v242_v25, 1 }
  0x46   : > { %v244_v28 = vmax.f32 %v242_v25, %v243_v27 }
  0x48   : > { %v247_v29 = vcombine.low %v237_v26, %v244_v28 }
  0x4a   : > { %v249_v30 = vsub.f32 %v225_v13, %v247_v29 }
  0x4c   : > { %v250_v31 = vmul.f32 1.442695, %v249_v30 }
  0x4e   : > { %550 = vpow2.f32 %v250_v31 }
  0x5b   : > { %v551_v32 = vpop.eup %550 }
  0x5c   : > { %v253_v33 = vcombine.high %v551_v32, %v551_v32  ;;  %v255_v34 = vsel %vm230_vm1, %v551_v32, 0.0 }
  0x5d   : > { %v256_v35 = vrot.slane %v255_v34, 4 }
  0x5e   : > { %v262_v36 = vsel %vm230_vm1, %v253_v33, 0.0 }
  0x5f   : > { %v257_v37 = vadd.f32 %v256_v35, %v255_v34  ;;  %v263_v38 = vrot.slane %v262_v36, 4 }
  0x61   : > { %v258_v39 = vrot.slane %v257_v37, 2  ;;  %v264_v40 = vadd.f32 %v263_v38, %v262_v36 }
  0x63   : > { %v259_v41 = vadd.f32 %v258_v39, %v257_v37  ;;  %v265_v42 = vrot.slane %v264_v40, 2 }
  0x65   : > { %v260_v43 = vrot.slane %v259_v41, 1  ;;  %v266_v44 = vadd.f32 %v265_v42, %v264_v40 }
  0x67   : > { %v261_v45 = vadd.f32 %v260_v43, %v259_v41  ;;  %v267_v46 = vrot.slane %v266_v44, 1 }
  0x69   : > { %v268_v47 = vadd.f32 %v267_v46, %v266_v44  ;;  %552 = vlog2.f32 %v261_v45 }
  0x6b   : > { %554 = vlog2.f32 %v268_v47 }
  0x76   : > { %v553_v48 = vpop.eup %552 }
  0x77   : > { %v270_v49 = vmul.f32 0.6931472, %v553_v48 }
  0x78   : > { %v555_v50 = vpop.eup %554 }
  0x79   : > { %v272_v51 = vmul.f32 0.6931472, %v555_v50  ;;  %v273_v52 = vadd.f32 %v270_v49, %v237_v26 }
  0x7b   : > { %v274_v53 = vadd.f32 %v272_v51, %v244_v28  ;;  %v301_v54 = vsub.f32 %v273_v52, %v225_v13 }
  0x7d   : > { %v302_v55 = vsub.f32 %v274_v53, %v228_v14  ;;  %v303_v56 = vmul.f32 %v474_v8, %v301_v54 }
  0x7f   : > { %v304_v57 = vmul.f32 %v475_v9, %v302_v55  ;;  %v305_v58 = vsel %vm230_vm1, %v303_v56, 0.0 }
  0x81   : > { %v306_v59 = vsel %vm230_vm1, %v304_v57, 0.0 }
  0x82   : > { %v307_v60 = vadd.f32 %v306_v59, %v305_v58 }
  0x84   : > { %308 = vadd.xlane.f32.xlu1 %v307_v60 }
  0xcd   : > { %v296_v62 = vpop.xlane.xlu0 %295 }
  0xce   : > { %v297_v63 = vadd.f32 %v296_v62, %v291_v61 }
  0xd0   : > { %299 = vst.msk [vmem:[#allocation2] sm:$0xf] %vm222_vm0, %v297_v63 }
  0xd7   : > { %v315_v0 = vld [vmem:[#allocation2] sm:$0xf] }
  0xd8   : > { %v317_v1 = vsel %vm222_vm0, %v315_v0, 0.0 }
  0xd9   : > { %318 = vadd.xlane.f32.xlu0 %v317_v1 }
 0x10d   : > { %v309_v3 = vpop.xlane.xlu1 %308 }
 0x10e   : > { %v310_v4 = vadd.f32 %v309_v3, %v300_v2 }
 0x110   : > { %311 = vst.msk [vmem:[#allocation3] sm:$0xf] %vm222_vm0, %v310_v4 }
 0x117   : > { %v316_v17 = vld [vmem:[#allocation3] sm:$0xf] }
 0x162   : > { %v319_v5 = vpop.xlane.xlu0 %318 }
 0x163   : > { %v320_v6 = vrot.slane %v319_v5, 4 }
 0x165   : > { %v321_v7 = vadd.f32 %v320_v6, %v319_v5 }
 0x167   : > { %v322_v8 = vrot.slane %v321_v7, 2 }
 0x169   : > { %v323_v9 = vadd.f32 %v322_v8, %v321_v7 }
 0x16b   : > { %v324_v10 = vrot.slane %v323_v9, 1 }
 0x16d   : > { %v325_v11 = vadd.f32 %v324_v10, %v323_v9 }
 0x16f   : > { %480 = vpush %v325_v11 }
 0x1a0   : > { %s481_s20 = spop %480 }
 0x1a1   : > { %p327_p7 = scmp.gt.f32.partialorder %s481_s20, 0.0 }
 0x1a3   : > { %s848_s20 = smov (!%p327_p7, %s481_s20), 1.0 }
 0x1a4   : > { %v329_v12 = vstv %s848_s20 }
 0x1a5   : > { %556 = vrcp.f32 %v329_v12 }
 0x1b2   : > { %v557_v13 = vpop.eup %556 }
 0x1b3   : > { %v331_v14 = vmul.f32 %v557_v13, %v315_v0 }
 0x1b5   : > { %vm332_vm4 = vcmp.ne.f32.partialorder %v331_v14, 0.0  ;;  %v333_v15 = vsub.f32 1.0, %v331_v14 }
 0x1b7   : > { %v334_v16 = vsel %vm332_vm4, %v333_v15, 0.0 }
 0x1b8   : > { %v335_v18 = vadd.f32 1.0, %v334_v16 }
 0x1ba   : > { %v347_v19 = vmul.f32 %v335_v18, %v315_v0  ;;  %v336_v20 = vmul.f32 %v335_v18, %v316_v17 }
 0x1bc   : > { %v348_v21 = vsel %vm222_vm0, %v347_v19, 0.0  ;;  %v337_v22 = vsel %vm222_vm0, %v336_v20, 0.0 }
 0x1bd   : > { %349 = vadd.xlane.f32.xlu0 %v348_v21  ;;  %338 = vadd.xlane.f32.xlu1 %v337_v22 }
 0x246   : > { %v350_v23 = vpop.xlane.xlu0 %349  ;;  %v339_v24 = vpop.xlane.xlu1 %338 }
 0x247   : > { %v351_v25 = vrot.slane %v350_v23, 4  ;;  %v340_v26 = vrot.slane %v339_v24, 4 }
 0x249   : > { %v352_v27 = vadd.f32 %v351_v25, %v350_v23  ;;  %v341_v28 = vadd.f32 %v340_v26, %v339_v24 }
 0x24b   : > { %v353_v29 = vrot.slane %v352_v27, 2  ;;  %v342_v30 = vrot.slane %v341_v28, 2 }
 0x24d   : > { %v354_v31 = vadd.f32 %v353_v29, %v352_v27  ;;  %v343_v32 = vadd.f32 %v342_v30, %v341_v28 }
 0x24f   : > { %v344_v33 = vrot.slane %v343_v32, 1  ;;  %v355_v34 = vrot.slane %v354_v31, 1 }
 0x251   : > { %v345_v35 = vadd.f32 %v344_v33, %v343_v32  ;;  %v356_v36 = vadd.f32 %v355_v34, %v354_v31 }
 0x253   : > { %482 = vpush %v345_v35 }
 0x254   : > { %484 = vpush %v356_v36 }
 0x284   : > { %s483_s30 = spop %482 }
 0x285   : > { %s485_s8 = spop %484 }
 0x286   : > { %v358_v37 = vstv %s485_s8 }
 0x287   : > { %558 = vrcp.f32 %v358_v37 }
 0x294   : > { %v559_v38 = vpop.eup %558 }
 0x295   : > { %486 = vpush %v559_v38 }
 0x2c6   : > { %s487_s15 = spop %486 }
 0x2c7   : > { %s361_s23 = smul.f32 %s487_s15, %s483_s30 }
 0x2c9   : > { %v362_v39 = vstv %s361_s23 }
 0x2ca   : > { %364 = vst.msk [vmem:[%s217_s19] sm:$0x1] %vm363_vm5, %v362_v39 }
 0x2cb PF: > { %s18_s14 = sadd.s32 1, %s670_s14   ;;  %s840_s9 = smov %s654_s10 }
 0x2cc   : > { %p15_p12 = scmp.ge.s32.totalorder %s18_s14, 4   ;;  %s841_s10 = smov %s658_s11 }
 0x2cd   : > { %s842_s11 = smov %s739_s21  ;;  %s843_s12 = smov %s666_s13 }
 0x2ce   : > { %s844_s13 = smov %s846_s16  ;;  %17 = sbr.rel (!%p15_p12) target bundleno = 6 (0x6), region = 89 }
 0x2d3   :  { %382 = vsyncpa [#allocation5], 1 }
 0x2d4   :  { %384 = vsyncpa [#allocation5 + $0x1], 1 }
 0x2d5   :  { %385 = vsyncpa [#allocation7], 1 }
 0x2d6   :  { %387 = vsyncpa [#allocation7 + $0x1], 1 }

</bundles_post_ra>
